<compile_context>
chip_gen: v7x
topology: tpu7x:2x2x1
jax: 0.10.0
libtpu: 0.0.40
codegen_flags: <defaults>
</compile_context>

<pallas_src>
import functools
import numpy as np
import jax
import jax.numpy as jnp
from jax.experimental import pallas as pl
from jax.experimental.pallas import tpu as pltpu

LANE = 128   # vreg lane width
SUB = 8      # vreg sublane count


def _round_up(n, m):
    return ((n + m - 1) // m) * m


def stock_rnn_kernel(x_ref, slab_ref, out_ref):
    """x_ref: (T, Bp, LANE) time-major padded input.
    slab_ref: (4*LANE + 8, LANE) packed weights/biases (see pack_params).
    out_ref: (Bp, LANE); real result sits in [:B, :O]."""
    T, Bp, L = x_ref.shape

    # Packed weight views (static, tile-aligned slices of the slab).
    w_in = slab_ref[0:L, :]              # input projection -> lanes 0..H-1
    w_big = slab_ref[L:2 * L, :]         # [[W_hh0, W_ih1], [0, W_hh1]]
    biases = slab_ref[4 * L:4 * L + SUB, :]
    b_step = biases[0:1, :]              # [b0 | b1 | 0]
    b_t0 = biases[1:2, :]                # [b0 |  0 | 0]  (keeps h1[-1] == 0)

    # Hoisted input projection: one matmul for all timesteps, no carried dep.
    u = jnp.dot(x_ref[...].reshape(T * Bp, L), w_in,
                preferred_element_type=jnp.float32).reshape(T, Bp, L)
    a_all = u + b_step                   # per-step addends, off the serial chain

    # Skewed fused recurrence: s = [h0[t] | h1[t-1] | 0] in lanes 0..L-1.
    s = jnp.tanh(u[0] + b_t0)            # t = 0: both states were zero -> no matmul
    for t in range(1, T):
        s = jnp.tanh(jnp.dot(s, w_big, preferred_element_type=jnp.float32)
                     + a_all[t])
    # Epilogue: un-skew layer 1 -> lanes H..2H-1 now hold h1[T-1] (the stale
    # left half is masked out by the zero rows of the packed fc1 weight).
    s = jnp.tanh(jnp.dot(s, w_big, preferred_element_type=jnp.float32) + b_step)

    # fc1 -> ReLU -> fc2 (fc1 weight rows select lanes H..2H-1 of s).
    w_fc1 = slab_ref[2 * L:3 * L, :]
    w_fc2 = slab_ref[3 * L:4 * L, :]
    b_fc1 = biases[2:3, :]
    b_fc2 = biases[3:4, :]
    z = jnp.maximum(jnp.dot(s, w_fc1, preferred_element_type=jnp.float32)
                    + b_fc1, 0.0)
    y = jnp.dot(z, w_fc2, preferred_element_type=jnp.float32) + b_fc2
    out_ref[...] = y.astype(out_ref.dtype)


def pack_params(params, lane=LANE):
    """One-time weight packing (runs at parameter-load time, not per call).

    Slab rows:
      [0,   L)   w_in  : rows 0..I-1,   cols 0..H-1    = W_ih0^T
      [L,  2L)   w_big : [0..H-1, 0..H-1]   = W_hh0^T
                         [0..H-1, H..2H-1]  = W_ih1^T
                         [H..2H-1, H..2H-1] = W_hh1^T
      [2L, 3L)   w_fc1 : rows H..2H-1, cols 0..H-1     = fc1_w^T
      [3L, 4L)   w_fc2 : rows 0..H-1,  cols 0..O-1     = fc2_w^T
      [4L, 4L+8) bias rows: 0:[b0|b1]  1:[b0|0]  2:fc1_b  3:fc2_b
    """
    L = lane
    H = params["w_hh_l0"].shape[0]
    I = params["w_ih_l0"].shape[1]
    O = params["fc2_w"].shape[0]
    assert I <= L and 2 * H <= L and O <= L, "config must fit one 128-lane tile"
    p = {k: np.asarray(v, np.float32) for k, v in params.items()}

    slab = np.zeros((4 * L + SUB, L), np.float32)
    slab[0:I, 0:H] = p["w_ih_l0"].T
    slab[L:L + H, 0:H] = p["w_hh_l0"].T
    slab[L:L + H, H:2 * H] = p["w_ih_l1"].T
    slab[L + H:L + 2 * H, H:2 * H] = p["w_hh_l1"].T
    slab[2 * L + H:2 * L + 2 * H, 0:H] = p["fc1_w"].T
    slab[3 * L:3 * L + H, 0:O] = p["fc2_w"].T
    slab[4 * L + 0, 0:H] = p["b_ih_l0"] + p["b_hh_l0"]
    slab[4 * L + 0, H:2 * H] = p["b_ih_l1"] + p["b_hh_l1"]
    slab[4 * L + 1, 0:H] = p["b_ih_l0"] + p["b_hh_l0"]
    slab[4 * L + 2, 0:H] = p["fc1_b"]
    slab[4 * L + 3, 0:O] = p["fc2_b"]
    return jnp.asarray(slab), int(I), int(O)


@functools.partial(jax.jit, static_argnums=(2, 3))
def stock_model_rnn_forward(x, slab, input_size, output_size):
    """x: (B, T, I) float32, batch-first.  slab: output of pack_params."""
    B, T, I = x.shape
    assert I == input_size
    L = slab.shape[1]
    Bp = _round_up(B, SUB)

    # Per-call prep: time-major + full-tile padding (padded rows/lanes stay
    # inert — zero weight rows/cols keep them from contaminating real outputs).
    x_tm = jnp.transpose(x, (1, 0, 2)).astype(jnp.float32)
    x_p = jnp.pad(x_tm, ((0, 0), (0, Bp - B), (0, L - I)))

    vmem = pl.BlockSpec(memory_space=pltpu.MemorySpace.VMEM)
    # Single grid point: all operands (~0.3 MiB total) fit VMEM on v5e/v6e/v7x.
    # TODO(synk): for larger B, add a batch-parallel grid axis
    # (dimension_semantics=("parallel",), constant index_map on the slab) so
    # v7x's second TensorCore is used, sizing blocks against its 64 MiB VMEM.
    out_p = pl.pallas_call(
        stock_rnn_kernel,
        out_shape=jax.ShapeDtypeStruct((Bp, L), jnp.float32),
        in_specs=[vmem, vmem],
        out_specs=vmem,
    )(x_p, slab)
    return out_p[:B, :output_size]


def reference_forward(x, params):
    """Pure-JAX reference matching PyTorch nn.RNN(tanh, 2 layers) + fc1/relu/fc2."""
    B, T, I = x.shape
    H = params["w_hh_l0"].shape[0]
    h0 = jnp.zeros((B, H), jnp.float32)
    h1 = jnp.zeros((B, H), jnp.float32)
    for t in range(T):
        x_t = x[:, t, :]
        h0 = jnp.tanh(x_t @ params["w_ih_l0"].T + params["b_ih_l0"]
                      + h0 @ params["w_hh_l0"].T + params["b_hh_l0"])
        h1 = jnp.tanh(h0 @ params["w_ih_l1"].T + params["b_ih_l1"]
                      + h1 @ params["w_hh_l1"].T + params["b_hh_l1"])
    z = jnp.maximum(h1 @ params["fc1_w"].T + params["fc1_b"], 0.0)
    return z @ params["fc2_w"].T + params["fc2_b"]


def init_params(key, input_size, hidden_size, output_size):
    """Deterministic init mimicking PyTorch's U(-1/sqrt(H), 1/sqrt(H))."""
    H, I, O = hidden_size, input_size, output_size
    bound = 1.0 / np.sqrt(H)
    shapes = {
        "w_ih_l0": (H, I), "w_hh_l0": (H, H), "b_ih_l0": (H,), "b_hh_l0": (H,),
        "w_ih_l1": (H, H), "w_hh_l1": (H, H), "b_ih_l1": (H,), "b_hh_l1": (H,),
        "fc1_w": (H, H), "fc1_b": (H,),
        "fc2_w": (O, H), "fc2_b": (O,),
    }
    params = {}
    keys = jax.random.split(key, len(shapes))
    for k, (name, shp) in zip(keys, shapes.items()):
        params[name] = jax.random.uniform(
            k, shp, dtype=jnp.float32, minval=-bound, maxval=bound)
    return params


if __name__ == "__main__":
    # config['model'] equivalent (num_layers=2 so `(hn, cn)` unpacking works).
    config = dict(input_size=8, hidden_size=32, num_layers=2, output_size=1)
    B, T = 4, 8

    root = jax.random.PRNGKey(0)
    k_params, k_x = jax.random.split(root)
    params = init_params(k_params, config["input_size"],
                         config["hidden_size"], config["output_size"])
    x = jax.random.normal(k_x, (B, T, config["input_size"]), dtype=jnp.float32)

    # One-time weight packing (outside the per-call path).
    slab, in_size, out_size = pack_params(params)

    out = stock_model_rnn_forward(x, slab, in_size, out_size)
    out = jax.block_until_ready(out)

    ref = reference_forward(x, params)
    assert out.shape == (B, config["output_size"])
    np.testing.assert_allclose(np.asarray(out), np.asarray(ref),
                               rtol=1e-4, atol=5e-5)
    print("KERNEL_OK")
</pallas_src>

<mosaic_0001>
module attributes {stable_mosaic.version = 11 : i64} {
  func.func @stock_rnn_kernel(%arg0: memref<8x8x128xf32, #tpu.memory_space<vmem>>, %arg1: memref<520x128xf32, #tpu.memory_space<vmem>>, %arg2: memref<8x128xf32, #tpu.memory_space<vmem>>) attributes {dimension_semantics = [], scalar_prefetch = 0 : i64, scratch_operands = 0 : i64, tpu.core_type = #tpu.core_type<tc>} {
    %c0 = arith.constant 0 : index
    %c0_0 = arith.constant 0 : index
    %0 = vector.load %arg1[%c0, %c0_0] : memref<520x128xf32, #tpu.memory_space<vmem>>, vector<128x128xf32>
    %c128 = arith.constant 128 : index
    %c0_1 = arith.constant 0 : index
    %1 = vector.load %arg1[%c128, %c0_1] : memref<520x128xf32, #tpu.memory_space<vmem>>, vector<128x128xf32>
    %c512 = arith.constant 512 : index
    %c0_2 = arith.constant 0 : index
    %2 = vector.load %arg1[%c512, %c0_2] : memref<520x128xf32, #tpu.memory_space<vmem>>, vector<8x128xf32>
    %3 = vector.extract_strided_slice %2 {offsets = [0, 0], sizes = [1, 128], strides = [1, 1]} : vector<8x128xf32> to vector<1x128xf32>
    %4 = vector.extract_strided_slice %2 {offsets = [1, 0], sizes = [1, 128], strides = [1, 1]} : vector<8x128xf32> to vector<1x128xf32>
    %c0_3 = arith.constant 0 : index
    %c0_4 = arith.constant 0 : index
    %c0_5 = arith.constant 0 : index
    %5 = vector.load %arg0[%c0_3, %c0_4, %c0_5] : memref<8x8x128xf32, #tpu.memory_space<vmem>>, vector<8x8x128xf32>
    %6 = vector.shape_cast %5 : vector<8x8x128xf32> to vector<64x128xf32>
    %cst = arith.constant dense<0.000000e+00> : vector<64x128xf32>
    %7 = tpu.matmul %6, %0, %cst {dimension_numbers = #tpu.dot_dimension_numbers<[1], [0], [0], [1], [0, 0, 1, 1], [], []>} : vector<64x128xf32>, vector<128x128xf32>, vector<64x128xf32> -> vector<64x128xf32>
    %8 = vector.shape_cast %7 : vector<64x128xf32> to vector<8x8x128xf32>
    %9 = vector.shape_cast %3 : vector<1x128xf32> to vector<1x1x128xf32>
    %10 = vector.broadcast %9 : vector<1x1x128xf32> to vector<8x8x128xf32>
    %11 = arith.addf %8, %10 : vector<8x8x128xf32>
    %12 = vector.extract_strided_slice %8 {offsets = [0, 0, 0], sizes = [1, 8, 128], strides = [1, 1, 1]} : vector<8x8x128xf32> to vector<1x8x128xf32>
    %13 = vector.shape_cast %12 : vector<1x8x128xf32> to vector<8x128xf32>
    %14 = vector.broadcast %4 : vector<1x128xf32> to vector<8x128xf32>
    %15 = arith.addf %13, %14 : vector<8x128xf32>
    %16 = math.tanh %15 : vector<8x128xf32>
    %cst_6 = arith.constant dense<0.000000e+00> : vector<8x128xf32>
    %17 = tpu.matmul %16, %1, %cst_6 {dimension_numbers = #tpu.dot_dimension_numbers<[1], [0], [0], [1], [0, 0, 1, 1], [], []>} : vector<8x128xf32>, vector<128x128xf32>, vector<8x128xf32> -> vector<8x128xf32>
    %18 = vector.extract_strided_slice %11 {offsets = [1, 0, 0], sizes = [1, 8, 128], strides = [1, 1, 1]} : vector<8x8x128xf32> to vector<1x8x128xf32>
    %19 = vector.shape_cast %18 : vector<1x8x128xf32> to vector<8x128xf32>
    %20 = arith.addf %17, %19 : vector<8x128xf32>
    %21 = math.tanh %20 : vector<8x128xf32>
    %cst_7 = arith.constant dense<0.000000e+00> : vector<8x128xf32>
    %22 = tpu.matmul %21, %1, %cst_7 {dimension_numbers = #tpu.dot_dimension_numbers<[1], [0], [0], [1], [0, 0, 1, 1], [], []>} : vector<8x128xf32>, vector<128x128xf32>, vector<8x128xf32> -> vector<8x128xf32>
    %23 = vector.extract_strided_slice %11 {offsets = [2, 0, 0], sizes = [1, 8, 128], strides = [1, 1, 1]} : vector<8x8x128xf32> to vector<1x8x128xf32>
    %24 = vector.shape_cast %23 : vector<1x8x128xf32> to vector<8x128xf32>
    %25 = arith.addf %22, %24 : vector<8x128xf32>
    %26 = math.tanh %25 : vector<8x128xf32>
    %cst_8 = arith.constant dense<0.000000e+00> : vector<8x128xf32>
    %27 = tpu.matmul %26, %1, %cst_8 {dimension_numbers = #tpu.dot_dimension_numbers<[1], [0], [0], [1], [0, 0, 1, 1], [], []>} : vector<8x128xf32>, vector<128x128xf32>, vector<8x128xf32> -> vector<8x128xf32>
    %28 = vector.extract_strided_slice %11 {offsets = [3, 0, 0], sizes = [1, 8, 128], strides = [1, 1, 1]} : vector<8x8x128xf32> to vector<1x8x128xf32>
    %29 = vector.shape_cast %28 : vector<1x8x128xf32> to vector<8x128xf32>
    %30 = arith.addf %27, %29 : vector<8x128xf32>
    %31 = math.tanh %30 : vector<8x128xf32>
    %cst_9 = arith.constant dense<0.000000e+00> : vector<8x128xf32>
    %32 = tpu.matmul %31, %1, %cst_9 {dimension_numbers = #tpu.dot_dimension_numbers<[1], [0], [0], [1], [0, 0, 1, 1], [], []>} : vector<8x128xf32>, vector<128x128xf32>, vector<8x128xf32> -> vector<8x128xf32>
    %33 = vector.extract_strided_slice %11 {offsets = [4, 0, 0], sizes = [1, 8, 128], strides = [1, 1, 1]} : vector<8x8x128xf32> to vector<1x8x128xf32>
    %34 = vector.shape_cast %33 : vector<1x8x128xf32> to vector<8x128xf32>
    %35 = arith.addf %32, %34 : vector<8x128xf32>
    %36 = math.tanh %35 : vector<8x128xf32>
    %cst_10 = arith.constant dense<0.000000e+00> : vector<8x128xf32>
    %37 = tpu.matmul %36, %1, %cst_10 {dimension_numbers = #tpu.dot_dimension_numbers<[1], [0], [0], [1], [0, 0, 1, 1], [], []>} : vector<8x128xf32>, vector<128x128xf32>, vector<8x128xf32> -> vector<8x128xf32>
    %38 = vector.extract_strided_slice %11 {offsets = [5, 0, 0], sizes = [1, 8, 128], strides = [1, 1, 1]} : vector<8x8x128xf32> to vector<1x8x128xf32>
    %39 = vector.shape_cast %38 : vector<1x8x128xf32> to vector<8x128xf32>
    %40 = arith.addf %37, %39 : vector<8x128xf32>
    %41 = math.tanh %40 : vector<8x128xf32>
    %cst_11 = arith.constant dense<0.000000e+00> : vector<8x128xf32>
    %42 = tpu.matmul %41, %1, %cst_11 {dimension_numbers = #tpu.dot_dimension_numbers<[1], [0], [0], [1], [0, 0, 1, 1], [], []>} : vector<8x128xf32>, vector<128x128xf32>, vector<8x128xf32> -> vector<8x128xf32>
    %43 = vector.extract_strided_slice %11 {offsets = [6, 0, 0], sizes = [1, 8, 128], strides = [1, 1, 1]} : vector<8x8x128xf32> to vector<1x8x128xf32>
    %44 = vector.shape_cast %43 : vector<1x8x128xf32> to vector<8x128xf32>
    %45 = arith.addf %42, %44 : vector<8x128xf32>
    %46 = math.tanh %45 : vector<8x128xf32>
    %cst_12 = arith.constant dense<0.000000e+00> : vector<8x128xf32>
    %47 = tpu.matmul %46, %1, %cst_12 {dimension_numbers = #tpu.dot_dimension_numbers<[1], [0], [0], [1], [0, 0, 1, 1], [], []>} : vector<8x128xf32>, vector<128x128xf32>, vector<8x128xf32> -> vector<8x128xf32>
    %48 = vector.extract_strided_slice %11 {offsets = [7, 0, 0], sizes = [1, 8, 128], strides = [1, 1, 1]} : vector<8x8x128xf32> to vector<1x8x128xf32>
    %49 = vector.shape_cast %48 : vector<1x8x128xf32> to vector<8x128xf32>
    %50 = arith.addf %47, %49 : vector<8x128xf32>
    %51 = math.tanh %50 : vector<8x128xf32>
    %cst_13 = arith.constant dense<0.000000e+00> : vector<8x128xf32>
    %52 = tpu.matmul %51, %1, %cst_13 {dimension_numbers = #tpu.dot_dimension_numbers<[1], [0], [0], [1], [0, 0, 1, 1], [], []>} : vector<8x128xf32>, vector<128x128xf32>, vector<8x128xf32> -> vector<8x128xf32>
    %53 = vector.broadcast %3 : vector<1x128xf32> to vector<8x128xf32>
    %54 = arith.addf %52, %53 : vector<8x128xf32>
    %55 = math.tanh %54 : vector<8x128xf32>
    %c256 = arith.constant 256 : index
    %c0_14 = arith.constant 0 : index
    %56 = vector.load %arg1[%c256, %c0_14] : memref<520x128xf32, #tpu.memory_space<vmem>>, vector<128x128xf32>
    %c384 = arith.constant 384 : index
    %c0_15 = arith.constant 0 : index
    %57 = vector.load %arg1[%c384, %c0_15] : memref<520x128xf32, #tpu.memory_space<vmem>>, vector<128x128xf32>
    %58 = vector.extract_strided_slice %2 {offsets = [2, 0], sizes = [1, 128], strides = [1, 1]} : vector<8x128xf32> to vector<1x128xf32>
    %59 = vector.extract_strided_slice %2 {offsets = [3, 0], sizes = [1, 128], strides = [1, 1]} : vector<8x128xf32> to vector<1x128xf32>
    %cst_16 = arith.constant dense<0.000000e+00> : vector<8x128xf32>
    %60 = tpu.matmul %55, %56, %cst_16 {dimension_numbers = #tpu.dot_dimension_numbers<[1], [0], [0], [1], [0, 0, 1, 1], [], []>} : vector<8x128xf32>, vector<128x128xf32>, vector<8x128xf32> -> vector<8x128xf32>
    %61 = vector.broadcast %58 : vector<1x128xf32> to vector<8x128xf32>
    %62 = arith.addf %60, %61 : vector<8x128xf32>
    %cst_17 = arith.constant 0.000000e+00 : f32
    %63 = vector.broadcast %cst_17 : f32 to vector<8x128xf32>
    %64 = arith.maximumf %62, %63 : vector<8x128xf32>
    %cst_18 = arith.constant dense<0.000000e+00> : vector<8x128xf32>
    %65 = tpu.matmul %64, %57, %cst_18 {dimension_numbers = #tpu.dot_dimension_numbers<[1], [0], [0], [1], [0, 0, 1, 1], [], []>} : vector<8x128xf32>, vector<128x128xf32>, vector<8x128xf32> -> vector<8x128xf32>
    %66 = vector.broadcast %59 : vector<1x128xf32> to vector<8x128xf32>
    %67 = arith.addf %65, %66 : vector<8x128xf32>
    %c0_19 = arith.constant 0 : index
    %c0_20 = arith.constant 0 : index
    %68 = vector.load %arg2[%c0_19, %c0_20] : memref<8x128xf32, #tpu.memory_space<vmem>>, vector<8x128xf32>
    tpu.vector_store %arg2[%c0_19, %c0_20], %67 {strides = array<i32>} : memref<8x128xf32, #tpu.memory_space<vmem>>, vector<8x128xf32>,
    return
  }
}

</mosaic_0001>

<bundles_post_ra>
// kernel: stock_model_rnn_forward.1
= control target key start
LH: loop header
LB: loop body
LE: loop exit
PB: predicated region body
PF: predicated region fallthrough
CT: control target
= control target key end

     0   :  { %7 = vsyncpa [#allocation3], 0  ;;  %s1851_s9 = smov [#allocation2]   ;;  %s2122_s0 = inlined_call_operand.vmem [shape: f32[8,8,128], index: 0, kind: input, shape index: {}]   ;;  %s2123_s1 = inlined_call_operand.hbm [shape: f32[520,128], index: 1, kind: input, shape index: {}]   ;;  %s2124_s2 = inlined_call_operand.vmem [shape: f32[8,128], index: 2, kind: output, shape index: {}]  }
   0x1   :  { %s15_s10 = sshll.u32 %s1851_s9, 4  ;;  %s1827_s13 = scalar_lea.hbm %s2123_s1, 8320  ;;  %s16_s10 = int_to_ptr.vmem [resolvable:$true] %s15_s10 }
   0x2   :  { %p1828_p0 = scmp.ne.s32.totalorder %s2123_s1, %s1827_s13  ;;  %p1831_p1 = scmp.lt.u32.totalorder %s1827_s13, %s2123_s1 }
   0x4   :  { %p1833_p2 = pnand %p1831_p1, %p1828_p0 }
   0x6   :  { %1836 = shalt.err (!%p1833_p2)
}
   0x7   :  { %s1837_s18 = scalar_lea.vmem %s16_s10, 8320  ;;  %p1842_p4 = scmp.lt.s32.totalorder %s16_s10, %s16_s10 }
   0x8   :  { %p1838_p3 = scmp.ne.s32.totalorder %s16_s10, %s1837_s18  ;;  %p1843_p5 = scmp.lt.s32.totalorder %s1837_s18, %s1837_s18 }
   0xa   :  { %p1844_p6 = por %p1843_p5, %p1842_p4 }
   0xc   :  { %p1845_p7 = pnand %p1844_p6, %p1838_p3 }
   0xe   :  { %1848 = shalt.err (!%p1845_p7)
}
   0xf   :  { %s1852_s19 = smov 128   ;;  %s1853_s20 = smov 8  }
  0x10   :  { %21 = dma.hbm_to_vmem [thread:$0]  %s2123_s1, 8320, %s16_s10, [#allocation3], %s1852_s19, %s1852_s19, %s1853_s20  }
  0x11   :  { %1849 = dma.done.wait [#allocation3], 8320  }
  0x12   :  { %1850 = vsyncadd [#allocation3], 4294958976  ;;  %v1854_v0 = vmov 0.0|0.0   ;;  %v25_v1 = vld [vmem:[#allocation2] sm:$0xff]  ;;  %v26_v2 = vld [vmem:[#allocation2 + $0x8] sm:$0xff]  ;;  %vm1855_vm0 = vmmov 0   ;;  %v171_v53 = vlaneseq }
  0x13   :  { %1563 = vmatprep.subr.bf16.mxu1 %v1854_v0  ;;  %v27_v3 = vld [vmem:[#allocation2 + $0x10] sm:$0xff]  ;;  %v1531_v4 = vpack.c.bf16 %v26_v2, %v25_v1  ;;  %v28_v5 = vld [vmem:[#allocation2 + $0x18] sm:$0xff]  ;;  %v29_v7 = vld [vmem:[#allocation2 + $0x20] sm:$0xff]  ;;  %v1856_v50 = vmov 0.0  }
  0x14   :  { %v1535_v6 = vpack.c.bf16 %v28_v5, %v27_v3  ;;  %v30_v8 = vld [vmem:[#allocation2 + $0x28] sm:$0xff]  ;;  %v31_v10 = vld [vmem:[#allocation2 + $0x30] sm:$0xff]  ;;  %v32_v11 = vld [vmem:[#allocation2 + $0x38] sm:$0xff]  ;;  %1213 = vmatprep.mubr.msk.f32.mxu1 %vm1855_vm0, %v1856_v50  ;;  %v1945_v54 = vshrl.u32 %v171_v53, 7 }
  0x15   :  { %1532 = vmatprep.subr.bf16.mxu0 %v1531_v4  ;;  %v1539_v9 = vpack.c.bf16 %v30_v8, %v29_v7  ;;  %v58_v12 = vld [vmem:[%s2122_s0] sm:$0xff]  ;;  %v42_v14 = vld [vmem:[#allocation2 + $0x88] sm:$0xff]  ;;  %v43_v15 = vld [vmem:[#allocation2 + $0x90] sm:$0xff]  ;;  %v1543_v18 = vpack.c.bf16 %v32_v11, %v31_v10 }
  0x16   :  { %1534 = vmatpush3.bf16.msra.mxu0 %v1531_v4  ;;  %1169 = vmatprep.mubr.f32.mxu0 %v58_v12  ;;  %v41_v13 = vld [vmem:[#allocation2 + $0x80] sm:$0xff]  ;;  %v44_v17 = vld [vmem:[#allocation2 + $0x98] sm:$0xff]  ;;  %v34_v21 = vld [vmem:[#allocation2 + $0x48] sm:$0xff]  ;;  %v184_v55 = vsub.s32 1, %v1945_v54  ;;  %v173_v4 = vsub.s32 0, %v1945_v54 }
  0x17   :  { %1536 = vmatprep.subr.bf16.mxu0 %v1535_v6  ;;  %v1888_v16 = vpack.c.bf16 %v42_v14, %v41_v13  ;;  %v33_v19 = vld [vmem:[#allocation2 + $0x40] sm:$0xff]  ;;  %v1891_v20 = vpack.c.bf16 %v44_v17, %v43_v15  ;;  %v46_v23 = vld [vmem:[#allocation2 + $0xa8] sm:$0xff]  ;;  %v35_v25 = vld [vmem:[#allocation2 + $0x50] sm:$0xff] }
  0x18   :  { %v45_v22 = vld [vmem:[#allocation2 + $0xa0] sm:$0xff]  ;;  %v1547_v24 = vpack.c.bf16 %v34_v21, %v33_v19  ;;  %v36_v27 = vld [vmem:[#allocation2 + $0x58] sm:$0xff]  ;;  %v47_v28 = vld [vmem:[#allocation2 + $0xb0] sm:$0xff] }
  0x19   :  { %1565 = vmatpush3.bf16.msra.mxu1 %v1888_v16  ;;  %v1895_v26 = vpack.c.bf16 %v46_v23, %v45_v22  ;;  %v48_v29 = vld [vmem:[#allocation2 + $0xb8] sm:$0xff]  ;;  %v1551_v30 = vpack.c.bf16 %v36_v27, %v35_v25  ;;  %v37_v32 = vld [vmem:[#allocation2 + $0x60] sm:$0xff]  ;;  %v38_v33 = vld [vmem:[#allocation2 + $0x68] sm:$0xff] }
  0x1a   :  { %1538 = vmatpush3.bf16.msra.mxu0 %v1535_v6  ;;  %1566 = vmatprep.subr.bf16.mxu1 %v1854_v0  ;;  %v1899_v31 = vpack.c.bf16 %v48_v29, %v47_v28  ;;  %v1555_v34 = vpack.c.bf16 %v38_v33, %v37_v32  ;;  %v39_v35 = vld [vmem:[#allocation2 + $0x70] sm:$0xff]  ;;  %v40_v36 = vld [vmem:[#allocation2 + $0x78] sm:$0xff]  ;;  %v59_v38 = vld [vmem:[%s2122_s0 + $0x8] sm:$0xff] }
  0x1b   :  { %1540 = vmatprep.subr.bf16.mxu0 %v1539_v9  ;;  %v1559_v37 = vpack.c.bf16 %v40_v36, %v39_v35  ;;  %v49_v39 = vld [vmem:[#allocation2 + $0xc0] sm:$0xff]  ;;  %v50_v40 = vld [vmem:[#allocation2 + $0xc8] sm:$0xff]  ;;  %v51_v42 = vld [vmem:[#allocation2 + $0xd0] sm:$0xff] }
  0x1c   :  { %v1916_v41 = vpack.c.bf16 %v50_v40, %v49_v39  ;;  %v52_v43 = vld [vmem:[#allocation2 + $0xd8] sm:$0xff]  ;;  %v53_v45 = vld [vmem:[#allocation2 + $0xe0] sm:$0xff]  ;;  %v54_v46 = vld [vmem:[#allocation2 + $0xe8] sm:$0xff] }
  0x1d   :  { %1568 = vmatpush3.bf16.msra.mxu1 %v1891_v20  ;;  %v1922_v44 = vpack.c.bf16 %v52_v43, %v51_v42  ;;  %v1927_v47 = vpack.c.bf16 %v54_v46, %v53_v45  ;;  %v55_v48 = vld [vmem:[#allocation2 + $0xf0] sm:$0xff]  ;;  %v56_v49 = vld [vmem:[#allocation2 + $0xf8] sm:$0xff]  ;;  %v1948_v56 = vld [vmem:[#allocation2 + $0x200] sm:$0xff] }
  0x1e   :  { %1542 = vmatpush3.bf16.msra.mxu0 %v1539_v9  ;;  %1569 = vmatprep.subr.bf16.mxu1 %v1854_v0  ;;  %v1933_v51 = vpack.c.bf16 %v56_v49, %v55_v48  ;;  %v60_v52 = vld [vmem:[%s2122_s0 + $0x10] sm:$0xff]  ;;  %v185_v57 = vrot.slane %v1948_v56, %v184_v55  ;;  %v61_v62 = vld [vmem:[%s2122_s0 + $0x18] sm:$0xff]  ;;  %v62_v63 = vld [vmem:[%s2122_s0 + $0x20] sm:$0xff]  ;;  %v1988_v5 = vrot.slane %v1948_v56, %v173_v4 }
  0x1f   :  { %1544 = vmatprep.subr.bf16.mxu0 %v1543_v18  ;;  %v63_v1 = vld [vmem:[%s2122_s0 + $0x28] sm:$0xff]  ;;  %v64_v2 = vld [vmem:[%s2122_s0 + $0x30] sm:$0xff]  ;;  %v65_v3 = vld [vmem:[%s2122_s0 + $0x38] sm:$0xff] }
  0x20   :  { %v756_v42 = vld [vmem:[#allocation2 + $0x100] sm:$0xff]  ;;  %v757_v43 = vld [vmem:[#allocation2 + $0x108] sm:$0xff]  ;;  %v759_v46 = vld [vmem:[#allocation2 + $0x118] sm:$0xff] }
  0x21   :  { %1571 = vmatpush3.bf16.msra.mxu1 %v1895_v26  ;;  %v1756_v45 = vpack.c.bf16 %v757_v43, %v756_v42  ;;  %v760_v48 = vld [vmem:[#allocation2 + $0x120] sm:$0xff]  ;;  %v761_v49 = vld [vmem:[#allocation2 + $0x128] sm:$0xff]  ;;  %v763_v53 = vld [vmem:[#allocation2 + $0x138] sm:$0xff] }
  0x22   :  { %1546 = vmatpush3.bf16.msra.mxu0 %v1543_v18  ;;  %1572 = vmatprep.subr.bf16.mxu1 %v1854_v0 }
  0x23   :  { %1548 = vmatprep.subr.bf16.mxu0 %v1547_v24 }
  0x25   :  { %1574 = vmatpush3.bf16.msra.mxu1 %v1899_v31 }
  0x26   :  { %1550 = vmatpush3.bf16.msra.mxu0 %v1547_v24  ;;  %1575 = vmatprep.subr.bf16.mxu1 %v1854_v0 }
  0x27   :  { %1552 = vmatprep.subr.bf16.mxu0 %v1551_v30 }
  0x29   :  { %1577 = vmatpush3.bf16.msra.mxu1 %v1916_v41 }
  0x2a   :  { %1554 = vmatpush3.bf16.msra.mxu0 %v1551_v30  ;;  %1578 = vmatprep.subr.bf16.mxu1 %v1854_v0 }
  0x2b   :  { %1556 = vmatprep.subr.bf16.mxu0 %v1555_v34 }
  0x2d   :  { %1580 = vmatpush3.bf16.msra.mxu1 %v1922_v44 }
  0x2e   :  { %1558 = vmatpush3.bf16.msra.mxu0 %v1555_v34  ;;  %1581 = vmatprep.subr.bf16.mxu1 %v1854_v0 }
  0x2f   :  { %1560 = vmatprep.subr.bf16.mxu0 %v1559_v37 }
  0x31   :  { %1583 = vmatpush3.bf16.msra.mxu1 %v1927_v47 }
  0x32   :  { %1562 = vmatpush3.bf16.msra.mxu0 %v1559_v37  ;;  %1584 = vmatprep.subr.bf16.mxu1 %v1854_v0 }
  0x33   :  { %1587 = vmatprep.subr.bf16.mxu0 %v1854_v0 }
  0x35   :  { %1170 = vmatmul.mubr.f32.vlgmr.msra.gmra.mrb[0].mxu0 %v59_v38  ;;  %1586 = vmatpush3.bf16.msra.mxu1 %v1933_v51 }
  0x36   :  { %1589 = vmatpush3.bf16.msra.mxu0 %v1888_v16  ;;  %1611 = vmatprep.subr.bf16.mxu1 %v1854_v0 }
  0x37   :  { %1590 = vmatprep.subr.bf16.mxu0 %v1854_v0  ;;  %1172 = vmatprep.mubr.f32.mxu0 %v60_v52  ;;  %v762_v52 = vld [vmem:[#allocation2 + $0x130] sm:$0xff] }
  0x38   :  { %v1765_v55 = vpack.c.bf16 %v763_v53, %v762_v52 }
  0x39   :  { %1173 = vmatmul.mubr.f32.gmra.mrb[2].mxu0 %v61_v62 }
  0x3a   :  { %1592 = vmatpush3.bf16.msra.mxu0 %v1891_v20  ;;  %1175 = vmatprep.mubr.f32.mxu0 %v62_v63 }
  0x3b   :  { %1593 = vmatprep.subr.bf16.mxu0 %v1854_v0 }
  0x3d   :  { %1176 = vmatmul.mubr.f32.gmra.mrb[4].mxu0 %v63_v1 }
  0x3e   :  { %1595 = vmatpush3.bf16.msra.mxu0 %v1895_v26  ;;  %1178 = vmatprep.mubr.f32.mxu0 %v64_v2  ;;  %v766_v2 = vld [vmem:[#allocation2 + $0x150] sm:$0xff] }
  0x3f   :  { %1596 = vmatprep.subr.bf16.mxu0 %v1854_v0 }
  0x41   :  { %1179 = vmatmul.mubr.f32.gmra.mrb[6].mxu0 %v65_v3  ;;  %v767_v3 = vld [vmem:[#allocation2 + $0x158] sm:$0xff] }
  0x42   :  { %1598 = vmatpush3.bf16.msra.mxu0 %v1899_v31  ;;  %1248 = vmatprep.mubr.msk.f32.mxu0 %vm1855_vm0, %v1856_v50  ;;  %v1771_v4 = vpack.c.bf16 %v767_v3, %v766_v2 }
  0x43   :  { %1599 = vmatprep.subr.bf16.mxu0 %v1854_v0 }
  0x46   :  { %1601 = vmatpush3.bf16.msra.mxu0 %v1916_v41 }
  0x47   :  { %1602 = vmatprep.subr.bf16.mxu0 %v1854_v0 }
  0x4a   :  { %1604 = vmatpush3.bf16.msra.mxu0 %v1922_v44 }
  0x4b   :  { %1605 = vmatprep.subr.bf16.mxu0 %v1854_v0 }
  0x4e   :  { %1607 = vmatpush3.bf16.msra.mxu0 %v1927_v47 }
  0x4f   :  { %1608 = vmatprep.subr.bf16.mxu0 %v1854_v0 }
  0x52   :  { %1610 = vmatpush3.bf16.msra.mxu0 %v1933_v51 }
  0x53   :  { %1635 = vmatprep.subr.bf16.mxu0 %v1854_v0 }
 0x108   :  { %v1171_v58 = vpop.f32.mrb[0].mxu0 }
 0x109   :  { %v132_v59 = vpop.f32.mrb[1].mxu0  ;;  %v175_v6 = vadd.f32 %v1171_v58, %v1988_v5  ;;  %v765_v58 = vld [vmem:[#allocation2 + $0x148] sm:$0xff] }
 0x10a   :  { %v186_v60 = vadd.f32 %v185_v57, %v132_v59  ;;  %v764_v57 = vld [vmem:[#allocation2 + $0x140] sm:$0xff] }
 0x10b   :  { %v1768_v59 = vpack.c.bf16 %v765_v58, %v764_v57 }
 0x10c   :  { %1809 = vtanh.f32 %v186_v60  ;;  %v1174_v11 = vpop.f32.mrb[2].mxu0 }
 0x10d   :  { %v142_v12 = vpop.f32.mrb[3].mxu0  ;;  %v177_v24 = vadd.f32 %v1174_v11, %v1988_v5 }
 0x10e   :  { %v176_v18 = vadd.f32 %v1988_v5, %v142_v12  ;;  %v772_v12 = vld [vmem:[#allocation2 + $0x180] sm:$0xff] }
 0x110   :  { %v2009_v13 = vpop.f32.mrb[4].mxu0 }
 0x111   :  { %v152_v14 = vpop.f32.mrb[5].mxu0  ;;  %v179_v36 = vadd.f32 %v2009_v13, %v1988_v5  ;;  %v773_v13 = vld [vmem:[#allocation2 + $0x188] sm:$0xff] }
 0x112   :  { %v178_v30 = vadd.f32 %v1988_v5, %v152_v14  ;;  %v774_v14 = vld [vmem:[#allocation2 + $0x190] sm:$0xff] }
 0x114   :  { %v2011_v15 = vpop.f32.mrb[6].mxu0 }
 0x115   :  { %v2013_v17 = vpop.f32.mrb[7].mxu0  ;;  %v181_v60 = vadd.f32 %v2011_v15, %v1988_v5  ;;  %v775_v15 = vld [vmem:[#allocation2 + $0x198] sm:$0xff] }
 0x116   :  { %v1810_v61 = vpop.eup %1809 }
 0x117   :  { %1214 = vmatmul.mubr.f32.vlgmr.msra.gmra.mrb[0].mxu1 %v1810_v61 }
 0x118   :  { %1613 = vmatpush3.bf16.msra.mxu1 %v1888_v16  ;;  %1283 = vmatprep.mubr.msk.f32.mxu1 %vm1855_vm0, %v1856_v50 }
 0x119   :  { %1614 = vmatprep.subr.bf16.mxu1 %v1854_v0 }
 0x11c   :  { %1616 = vmatpush3.bf16.msra.mxu1 %v1891_v20 }
 0x11d   :  { %1617 = vmatprep.subr.bf16.mxu1 %v1854_v0 }
 0x120   :  { %1619 = vmatpush3.bf16.msra.mxu1 %v1895_v26 }
 0x121   :  { %1620 = vmatprep.subr.bf16.mxu1 %v1854_v0 }
 0x124   :  { %1622 = vmatpush3.bf16.msra.mxu1 %v1899_v31 }
 0x125   :  { %1623 = vmatprep.subr.bf16.mxu1 %v1854_v0 }
 0x128   :  { %1625 = vmatpush3.bf16.msra.mxu1 %v1916_v41 }
 0x129   :  { %1626 = vmatprep.subr.bf16.mxu1 %v1854_v0 }
 0x12c   :  { %1628 = vmatpush3.bf16.msra.mxu1 %v1922_v44 }
 0x12d   :  { %1629 = vmatprep.subr.bf16.mxu1 %v1854_v0 }
 0x130   :  { %1631 = vmatpush3.bf16.msra.mxu1 %v1927_v47 }
 0x131   :  { %1632 = vmatprep.subr.bf16.mxu1 %v1854_v0 }
 0x134   :  { %1634 = vmatpush3.bf16.msra.mxu1 %v1933_v51 }
 0x135   :  { %1659 = vmatprep.subr.bf16.mxu1 %v1854_v0 }
 0x1ea   :  { %v254_v7 = vpop.f32.mrb[0].mxu1 }
 0x1eb   :  { %v255_v8 = vadd.f32 %v254_v7, %v175_v6  ;;  %v1215_v9 = vpop.f32.mrb[1].mxu1  ;;  %v768_v6 = vld [vmem:[#allocation2 + $0x160] sm:$0xff]  ;;  %v769_v7 = vld [vmem:[#allocation2 + $0x168] sm:$0xff] }
 0x1ec   :  { %v770_v9 = vld [vmem:[#allocation2 + $0x170] sm:$0xff] }
 0x1ed   :  { %1811 = vtanh.f32 %v255_v8  ;;  %v1774_v8 = vpack.c.bf16 %v769_v7, %v768_v6 }
 0x1f7   :  { %v1812_v10 = vpop.eup %1811 }
 0x1f8   :  { %1249 = vmatmul.mubr.f32.vlgmr.msra.gmra.mrb[8].mxu0 %v1812_v10  ;;  %v771_v10 = vld [vmem:[#allocation2 + $0x178] sm:$0xff] }
 0x1f9   :  { %1637 = vmatpush3.bf16.msra.mxu0 %v1888_v16  ;;  %1318 = vmatprep.mubr.msk.f32.mxu0 %vm1855_vm0, %v1856_v50  ;;  %v1777_v11 = vpack.c.bf16 %v771_v10, %v770_v9 }
 0x1fa   :  { %1638 = vmatprep.subr.bf16.mxu0 %v1854_v0 }
 0x1fd   :  { %1640 = vmatpush3.bf16.msra.mxu0 %v1891_v20 }
 0x1fe   :  { %1641 = vmatprep.subr.bf16.mxu0 %v1854_v0 }
 0x201   :  { %1643 = vmatpush3.bf16.msra.mxu0 %v1895_v26 }
 0x202   :  { %1644 = vmatprep.subr.bf16.mxu0 %v1854_v0 }
 0x205   :  { %1646 = vmatpush3.bf16.msra.mxu0 %v1899_v31 }
 0x206   :  { %1647 = vmatprep.subr.bf16.mxu0 %v1854_v0 }
 0x209   :  { %1649 = vmatpush3.bf16.msra.mxu0 %v1916_v41 }
 0x20a   :  { %1650 = vmatprep.subr.bf16.mxu0 %v1854_v0 }
 0x20d   :  { %1652 = vmatpush3.bf16.msra.mxu0 %v1922_v44 }
 0x20e   :  { %1653 = vmatprep.subr.bf16.mxu0 %v1854_v0 }
 0x211   :  { %1655 = vmatpush3.bf16.msra.mxu0 %v1927_v47 }
 0x212   :  { %1656 = vmatprep.subr.bf16.mxu0 %v1854_v0 }
 0x215   :  { %1658 = vmatpush3.bf16.msra.mxu0 %v1933_v51 }
 0x216   :  { %1683 = vmatprep.subr.bf16.mxu0 %v1854_v0 }
 0x2cb   :  { %v325_v19 = vpop.f32.mrb[8].mxu0 }
 0x2cc   :  { %v326_v21 = vadd.f32 %v325_v19, %v176_v18  ;;  %v1250_v22 = vpop.f32.mrb[9].mxu0  ;;  %v776_v18 = vld [vmem:[#allocation2 + $0x1a0] sm:$0xff]  ;;  %v777_v19 = vld [vmem:[#allocation2 + $0x1a8] sm:$0xff] }
 0x2cd   :  { %v778_v22 = vld [vmem:[#allocation2 + $0x1b0] sm:$0xff] }
 0x2ce   :  { %1813 = vtanh.f32 %v326_v21  ;;  %v1786_v21 = vpack.c.bf16 %v777_v19, %v776_v18 }
 0x2d8   :  { %v1814_v23 = vpop.eup %1813 }
 0x2d9   :  { %1284 = vmatmul.mubr.f32.vlgmr.msra.gmra.mrb[2].mxu1 %v1814_v23  ;;  %v779_v23 = vld [vmem:[#allocation2 + $0x1b8] sm:$0xff] }
 0x2da   :  { %1661 = vmatpush3.bf16.msra.mxu1 %v1888_v16  ;;  %1353 = vmatprep.mubr.msk.f32.mxu1 %vm1855_vm0, %v1856_v50 }
 0x2db   :  { %1662 = vmatprep.subr.bf16.mxu1 %v1854_v0 }
 0x2de   :  { %1664 = vmatpush3.bf16.msra.mxu1 %v1891_v20 }
 0x2df   :  { %1665 = vmatprep.subr.bf16.mxu1 %v1854_v0 }
 0x2e2   :  { %1667 = vmatpush3.bf16.msra.mxu1 %v1895_v26 }
 0x2e3   :  { %1668 = vmatprep.subr.bf16.mxu1 %v1854_v0 }
 0x2e6   :  { %1670 = vmatpush3.bf16.msra.mxu1 %v1899_v31 }
 0x2e7   :  { %1671 = vmatprep.subr.bf16.mxu1 %v1854_v0 }
 0x2ea   :  { %1673 = vmatpush3.bf16.msra.mxu1 %v1916_v41 }
 0x2eb   :  { %1674 = vmatprep.subr.bf16.mxu1 %v1854_v0 }
 0x2ee   :  { %1676 = vmatpush3.bf16.msra.mxu1 %v1922_v44 }
 0x2ef   :  { %1677 = vmatprep.subr.bf16.mxu1 %v1854_v0 }
 0x2f2   :  { %1679 = vmatpush3.bf16.msra.mxu1 %v1927_v47 }
 0x2f3   :  { %1680 = vmatprep.subr.bf16.mxu1 %v1854_v0 }
 0x2f6   :  { %1682 = vmatpush3.bf16.msra.mxu1 %v1933_v51 }
 0x2f7   :  { %1707 = vmatprep.subr.bf16.mxu1 %v1854_v0 }
 0x3ac   :  { %v396_v25 = vpop.f32.mrb[2].mxu1 }
 0x3ad   :  { %v397_v27 = vadd.f32 %v396_v25, %v177_v24  ;;  %v1285_v28 = vpop.f32.mrb[3].mxu1  ;;  %v1789_v24 = vpack.c.bf16 %v779_v23, %v778_v22  ;;  %v780_v25 = vld [vmem:[#allocation2 + $0x1c0] sm:$0xff] }
 0x3af   :  { %1815 = vtanh.f32 %v397_v27  ;;  %v781_v27 = vld [vmem:[#allocation2 + $0x1c8] sm:$0xff] }
 0x3b0   :  { %v1792_v28 = vpack.c.bf16 %v781_v27, %v780_v25 }
 0x3b9   :  { %v1816_v29 = vpop.eup %1815 }
 0x3ba   :  { %1319 = vmatmul.mubr.f32.vlgmr.msra.gmra.mrb[10].mxu0 %v1816_v29  ;;  %v782_v29 = vld [vmem:[#allocation2 + $0x1d0] sm:$0xff] }
 0x3bb   :  { %1685 = vmatpush3.bf16.msra.mxu0 %v1888_v16  ;;  %1388 = vmatprep.mubr.msk.f32.mxu0 %vm1855_vm0, %v1856_v50 }
 0x3bc   :  { %1686 = vmatprep.subr.bf16.mxu0 %v1854_v0 }
 0x3bf   :  { %1688 = vmatpush3.bf16.msra.mxu0 %v1891_v20 }
 0x3c0   :  { %1689 = vmatprep.subr.bf16.mxu0 %v1854_v0 }
 0x3c3   :  { %1691 = vmatpush3.bf16.msra.mxu0 %v1895_v26 }
 0x3c4   :  { %1692 = vmatprep.subr.bf16.mxu0 %v1854_v0 }
 0x3c7   :  { %1694 = vmatpush3.bf16.msra.mxu0 %v1899_v31 }
 0x3c8   :  { %1695 = vmatprep.subr.bf16.mxu0 %v1854_v0 }
 0x3cb   :  { %1697 = vmatpush3.bf16.msra.mxu0 %v1916_v41 }
 0x3cc   :  { %1698 = vmatprep.subr.bf16.mxu0 %v1854_v0 }
 0x3cf   :  { %1700 = vmatpush3.bf16.msra.mxu0 %v1922_v44 }
 0x3d0   :  { %1701 = vmatprep.subr.bf16.mxu0 %v1854_v0 }
 0x3d3   :  { %1703 = vmatpush3.bf16.msra.mxu0 %v1927_v47 }
 0x3d4   :  { %1704 = vmatprep.subr.bf16.mxu0 %v1854_v0 }
 0x3d7   :  { %1706 = vmatpush3.bf16.msra.mxu0 %v1933_v51 }
 0x3d8   :  { %1731 = vmatprep.subr.bf16.mxu0 %v1854_v0 }
 0x48d   :  { %v467_v32 = vpop.f32.mrb[10].mxu0 }
 0x48e   :  { %v468_v33 = vadd.f32 %v467_v32, %v178_v30  ;;  %v1320_v34 = vpop.f32.mrb[11].mxu0  ;;  %v783_v30 = vld [vmem:[#allocation2 + $0x1d8] sm:$0xff] }
 0x48f   :  { %v1795_v32 = vpack.c.bf16 %v783_v30, %v782_v29  ;;  %v785_v34 = vld [vmem:[#allocation2 + $0x1e8] sm:$0xff] }
 0x490   :  { %1817 = vtanh.f32 %v468_v33  ;;  %v784_v33 = vld [vmem:[#allocation2 + $0x1e0] sm:$0xff] }
 0x49a   :  { %v1818_v35 = vpop.eup %1817 }
 0x49b   :  { %1354 = vmatmul.mubr.f32.vlgmr.msra.gmra.mrb[4].mxu1 %v1818_v35  ;;  %v1798_v35 = vpack.c.bf16 %v785_v34, %v784_v33 }
 0x49c   :  { %1709 = vmatpush3.bf16.msra.mxu1 %v1888_v16  ;;  %1423 = vmatprep.mubr.msk.f32.mxu1 %vm1855_vm0, %v1856_v50 }
 0x49d   :  { %1710 = vmatprep.subr.bf16.mxu1 %v1854_v0 }
 0x4a0   :  { %1712 = vmatpush3.bf16.msra.mxu1 %v1891_v20 }
 0x4a1   :  { %1713 = vmatprep.subr.bf16.mxu1 %v1854_v0 }
 0x4a4   :  { %1715 = vmatpush3.bf16.msra.mxu1 %v1895_v26 }
 0x4a5   :  { %1716 = vmatprep.subr.bf16.mxu1 %v1854_v0 }
 0x4a8   :  { %1718 = vmatpush3.bf16.msra.mxu1 %v1899_v31 }
 0x4a9   :  { %1719 = vmatprep.subr.bf16.mxu1 %v1854_v0 }
 0x4ac   :  { %1721 = vmatpush3.bf16.msra.mxu1 %v1916_v41 }
 0x4ad   :  { %1722 = vmatprep.subr.bf16.mxu1 %v1854_v0 }
 0x4b0   :  { %1724 = vmatpush3.bf16.msra.mxu1 %v1922_v44 }
 0x4b1   :  { %1725 = vmatprep.subr.bf16.mxu1 %v1854_v0 }
 0x4b4   :  { %1727 = vmatpush3.bf16.msra.mxu1 %v1927_v47 }
 0x4b5   :  { %1728 = vmatprep.subr.bf16.mxu1 %v1854_v0 }
 0x4b8   :  { %1730 = vmatpush3.bf16.msra.mxu1 %v1933_v51 }
 0x4b9   :  { %1755 = vmatprep.subr.bf16.mxu1 %v1854_v0 }
 0x56e   :  { %v538_v37 = vpop.f32.mrb[4].mxu1 }
 0x56f   :  { %v539_v38 = vadd.f32 %v538_v37, %v179_v36  ;;  %v1355_v39 = vpop.f32.mrb[5].mxu1 }
 0x571   :  { %1819 = vtanh.f32 %v539_v38 }
 0x57b   :  { %v1820_v40 = vpop.eup %1819 }
 0x57c   :  { %1389 = vmatmul.mubr.f32.vlgmr.msra.gmra.mrb[12].mxu0 %v1820_v40  ;;  %v786_v40 = vld [vmem:[#allocation2 + $0x1f0] sm:$0xff] }
 0x57d   :  { %1733 = vmatpush3.bf16.msra.mxu0 %v1888_v16  ;;  %1458 = vmatprep.mubr.msk.f32.mxu0 %vm1855_vm0, %v1856_v50  ;;  %v180_v16 = vadd.f32 %v1988_v5, %v2013_v17  ;;  %v1783_v17 = vpack.c.bf16 %v775_v15, %v774_v14 }
 0x57e   :  { %1734 = vmatprep.subr.bf16.mxu0 %v1854_v0 }
 0x581   :  { %1736 = vmatpush3.bf16.msra.mxu0 %v1891_v20 }
 0x582   :  { %1737 = vmatprep.subr.bf16.mxu0 %v1854_v0 }
 0x585   :  { %1739 = vmatpush3.bf16.msra.mxu0 %v1895_v26 }
 0x586   :  { %1740 = vmatprep.subr.bf16.mxu0 %v1854_v0 }
 0x589   :  { %1742 = vmatpush3.bf16.msra.mxu0 %v1899_v31 }
 0x58a   :  { %1743 = vmatprep.subr.bf16.mxu0 %v1854_v0 }
 0x58d   :  { %1745 = vmatpush3.bf16.msra.mxu0 %v1916_v41 }
 0x58e   :  { %1746 = vmatprep.subr.bf16.mxu0 %v1854_v0 }
 0x591   :  { %1748 = vmatpush3.bf16.msra.mxu0 %v1922_v44  ;;  %v758_v44 = vld [vmem:[#allocation2 + $0x110] sm:$0xff] }
 0x592   :  { %1749 = vmatprep.subr.bf16.mxu0 %v1854_v0 }
 0x595   :  { %1751 = vmatpush3.bf16.msra.mxu0 %v1927_v47  ;;  %v1759_v47 = vpack.c.bf16 %v759_v46, %v758_v44 }
 0x596   :  { %1752 = vmatprep.subr.bf16.mxu0 %v1854_v0 }
 0x599   :  { %1754 = vmatpush3.bf16.msra.mxu0 %v1933_v51  ;;  %v1762_v51 = vpack.c.bf16 %v761_v49, %v760_v48 }
 0x59a   :  { %1779 = vmatprep.subr.bf16.mxu0 %v1854_v0 }
 0x64f   :  { %v609_v20 = vpop.f32.mrb[12].mxu0 }
 0x650   :  { %v610_v26 = vadd.f32 %v609_v20, %v180_v16  ;;  %v1390_v31 = vpop.f32.mrb[13].mxu0  ;;  %v787_v16 = vld [vmem:[#allocation2 + $0x1f8] sm:$0xff] }
 0x651   :  { %v1801_v20 = vpack.c.bf16 %v787_v16, %v786_v40 }
 0x652   :  { %1821 = vtanh.f32 %v610_v26  ;;  %v790_v26 = vsub.s32 2, %v1945_v54 }
 0x654   :  { %v791_v31 = vrot.slane %v1948_v56, %v790_v26 }
 0x65c   :  { %v1822_v41 = vpop.eup %1821 }
 0x65d   :  { %1424 = vmatmul.mubr.f32.vlgmr.msra.gmra.mrb[6].mxu1 %v1822_v41 }
 0x65e   :  { %1493 = vmatprep.mubr.msk.f32.mxu1 %vm1855_vm0, %v1856_v50  ;;  %1757 = vmatpush3.bf16.msra.mxu1 %v1756_v45 }
 0x65f   :  { %1758 = vmatprep.subr.bf16.mxu1 %v1854_v0 }
 0x662   :  { %1760 = vmatpush3.bf16.msra.mxu1 %v1759_v47 }
 0x663   :  { %1761 = vmatprep.subr.bf16.mxu1 %v1854_v0 }
 0x666   :  { %1763 = vmatpush3.bf16.msra.mxu1 %v1762_v51 }
 0x667   :  { %1764 = vmatprep.subr.bf16.mxu1 %v1854_v0 }
 0x66a   :  { %1766 = vmatpush3.bf16.msra.mxu1 %v1765_v55 }
 0x66b   :  { %1767 = vmatprep.subr.bf16.mxu1 %v1854_v0 }
 0x66e   :  { %1769 = vmatpush3.bf16.msra.mxu1 %v1768_v59 }
 0x66f   :  { %1770 = vmatprep.subr.bf16.mxu1 %v1854_v0 }
 0x672   :  { %1772 = vmatpush3.bf16.msra.mxu1 %v1771_v4 }
 0x673   :  { %1773 = vmatprep.subr.bf16.mxu1 %v1854_v0 }
 0x676   :  { %1775 = vmatpush3.bf16.msra.mxu1 %v1774_v8 }
 0x677   :  { %1776 = vmatprep.subr.bf16.mxu1 %v1854_v0 }
 0x67a   :  { %1778 = vmatpush3.bf16.msra.mxu1 %v1777_v11 }
 0x730   :  { %v680_v61 = vpop.f32.mrb[6].mxu1 }
 0x731   :  { %v681_v62 = vadd.f32 %v680_v61, %v181_v60  ;;  %v1425_v63 = vpop.f32.mrb[7].mxu1 }
 0x733   :  { %1823 = vtanh.f32 %v681_v62 }
 0x73d   :  { %v1824_v1 = vpop.eup %1823 }
 0x73e   :  { %1459 = vmatmul.mubr.f32.vlgmr.msra.gmra.mrb[14].mxu0 %v1824_v1 }
 0x73f   :  { %1528 = vmatprep.mubr.msk.f32.mxu0 %vm1855_vm0, %v1856_v50  ;;  %v1780_v50 = vpack.c.bf16 %v773_v13, %v772_v12 }
 0x741   :  { %1781 = vmatpush3.bf16.msra.mxu0 %v1780_v50 }
 0x742   :  { %1782 = vmatprep.subr.bf16.mxu0 %v1854_v0 }
 0x745   :  { %1784 = vmatpush3.bf16.msra.mxu0 %v1783_v17 }
 0x746   :  { %1785 = vmatprep.subr.bf16.mxu0 %v1854_v0 }
 0x749   :  { %1787 = vmatpush3.bf16.msra.mxu0 %v1786_v21 }
 0x74a   :  { %1788 = vmatprep.subr.bf16.mxu0 %v1854_v0 }
 0x74d   :  { %1790 = vmatpush3.bf16.msra.mxu0 %v1789_v24 }
 0x74e   :  { %1791 = vmatprep.subr.bf16.mxu0 %v1854_v0 }
 0x751   :  { %1793 = vmatpush3.bf16.msra.mxu0 %v1792_v28 }
 0x752   :  { %1794 = vmatprep.subr.bf16.mxu0 %v1854_v0 }
 0x755   :  { %1796 = vmatpush3.bf16.msra.mxu0 %v1795_v32 }
 0x756   :  { %1797 = vmatprep.subr.bf16.mxu0 %v1854_v0 }
 0x759   :  { %1799 = vmatpush3.bf16.msra.mxu0 %v1798_v35 }
 0x75a   :  { %1800 = vmatprep.subr.bf16.mxu0 %v1854_v0  ;;  %v865_v0 = vsub.s32 3, %v1945_v54 }
 0x75d   :  { %1802 = vmatpush3.bf16.msra.mxu0 %v1801_v20 }
 0x811   :  { %v751_v36 = vpop.f32.mrb[14].mxu0 }
 0x812   :  { %v752_v37 = vadd.f32 %v751_v36, %v1988_v5  ;;  %v1460_v38 = vpop.f32.mrb[15].mxu0  ;;  %v866_v5 = vrot.slane %v1948_v56, %v865_v0 }
 0x814   :  { %1825 = vtanh.f32 %v752_v37 }
 0x81e   :  { %v1826_v39 = vpop.eup %1825 }
 0x81f   :  { %1494 = vmatmul.mubr.f32.vlgmr.msra.gmra.mrb[8].mxu1 %v1826_v39 }
 0x8f2   :  { %v858_v41 = vpop.f32.mrb[8].mxu1 }
 0x8f3   :  { %v859_v42 = vadd.f32 %v858_v41, %v791_v31  ;;  %v1495_v43 = vpop.f32.mrb[9].mxu1 }
 0x8f5   :  { %v862_v44 = vmax.f32 %v859_v42, 0.0 }
 0x8f7   :  { %1529 = vmatmul.mubr.f32.vlgmr.msra.gmra.mrb[16].mxu0 %v862_v44 }
 0x9ca   :  { %v933_v45 = vpop.f32.mrb[16].mxu0 }
 0x9cb   :  { %v934_v46 = vadd.f32 %v933_v45, %v866_v5  ;;  %v1530_v47 = vpop.f32.mrb[17].mxu0 }
 0x9cd   :  { %937 = vst [vmem:[%s2124_s2] sm:$0xff] %v934_v46 }
 0x9ce   :  { %942 = vsyncpa [#allocation3], 1 }

</bundles_post_ra>
